<compile_context>
chip_gen: v7x
topology: tpu7x:2x2x1
jax: 0.10.0
libtpu: 0.0.40
codegen_flags: <defaults>
</compile_context>

<pallas_src>
import math

import jax
import jax.numpy as jnp
from jax.experimental import pallas as pl
from jax.experimental.pallas import tpu as pltpu


# --------------------------- generation-aware VMEM budgets ---------------------------

def _vmem_budget():
    """Returns (vmem_capacity, tile_budget, vmem_limit_cap, per_operand_tile_target)."""
    try:
        capacity = int(pltpu.get_tpu_info().vmem_capacity_bytes)
    except Exception:  # pragma: no cover - conservative fallback off-TPU
        capacity = 64 << 20
    if capacity <= (64 << 20):          # v7x-class: 64 MiB physical VMEM per TensorCore
        return capacity, 28 << 20, 40 << 20, 2 << 20
    # v5e / v6e: 128 MiB physical VMEM
    return capacity, 64 << 20, 96 << 20, 4 << 20


def _vmem_limit(footprint_bytes, cap):
    # Real working set + headroom (no inflation); capped per generation, but never below
    # what the kernel actually needs.
    limit = max(footprint_bytes + (4 << 20), 16 << 20)
    return int(max(min(limit, cap), footprint_bytes + (1 << 20)))


def _round_up(x, m):
    return ((x + m - 1) // m) * m


# ----------------------------------- kernel bodies -----------------------------------

def _make_sum_scale_kernel(num_inputs, inv_scale):
    """Sum `num_inputs` refs in f32 and scale (mean over the selected layers)."""

    def kernel(*refs):
        out_ref = refs[num_inputs]
        acc = refs[0][...].astype(jnp.float32)
        for r in refs[1:num_inputs]:
            acc = acc + r[...].astype(jnp.float32)
        out_ref[...] = (acc * inv_scale).astype(out_ref.dtype)

    return kernel


def _make_reduced_kernel(num_inputs, inv_scale, seq_len, tn):
    """Mean over layers fused with mean over the sequence axis (grid axis 1)."""
    need_mask = (seq_len % tn) != 0

    def kernel(*refs):
        out_ref = refs[num_inputs]
        acc_ref = refs[num_inputs + 1]
        n = pl.program_id(1)

        @pl.when(n == 0)
        def _():
            acc_ref[...] = jnp.zeros_like(acc_ref)

        s = refs[0][...].astype(jnp.float32)
        for r in refs[1:num_inputs]:
            s = s + r[...].astype(jnp.float32)
        if need_mask:
            idx = jax.lax.broadcasted_iota(jnp.int32, s.shape, 1) + n * tn
            s = jnp.where(idx < seq_len, s, 0.0)
        acc_ref[...] += jnp.sum(s, axis=1)

        @pl.when(n == pl.num_programs(1) - 1)
        def _():
            out_ref[...] = (acc_ref[...] * inv_scale).astype(out_ref.dtype)

    return kernel


# ------------------------------- reduce=False (elementwise) -------------------------------

def _choose_slab(shape, total, itemsize):
    """Pick a lane-dense (rows, cols, pad) view, avoiding padding whenever possible."""
    last = shape[-1]
    # Trailing dim already lane aligned and a sane row width -> pure metadata reshape.
    if last % 128 == 0 and last * itemsize <= (2 << 20):
        return total // last, last, 0
    # Padding-free contiguous re-factorisation into a lane-dense slab.
    for cols in (2048, 1024, 512, 256, 128):
        if total % cols == 0:
            return total // cols, cols, 0
    # Last resort: pad the tail once (element count not 128-divisible).
    cols = 128
    rows = pl.cdiv(total, cols)
    return rows, cols, rows * cols - total


def _average_layers_elementwise(layer_arrs):
    L = len(layer_arrs)
    shape = tuple(layer_arrs[0].shape)
    dtype = layer_arrs[0].dtype
    itemsize = jnp.dtype(dtype).itemsize
    total = math.prod(shape)

    rows, cols, pad = _choose_slab(shape, total, itemsize)
    slabs = []
    for a in layer_arrs:
        if pad:
            slabs.append(jnp.pad(a.reshape(-1), (0, pad)).reshape(rows, cols))
        else:
            slabs.append(a.reshape(rows, cols))   # metadata-only reshape, no HBM copy

    capacity, budget, cap, tile_target = _vmem_budget()
    row_bytes = cols * itemsize
    # Total double-buffered footprint: 2 * (L inputs + 1 output) * tile.
    tr_budget = max((budget // (2 * (L + 1) * row_bytes)) // 8 * 8, 8)
    tr_target = max(_round_up(pl.cdiv(tile_target, row_bytes), 8), 8)
    tr = min(tr_budget, tr_target)

    if rows <= tr:
        # A single tile would cover everything.  On v7x, split mid-size slabs into >=2
        # "parallel" grid steps so both TensorCores participate; tiny slabs stay single-step.
        if capacity <= (64 << 20) and rows >= 16 and rows * row_bytes >= (2 << 20):
            tr = min(_round_up(pl.cdiv(rows, 2), 8), rows)
        else:
            tr = rows

    grid_r = pl.cdiv(rows, tr)
    footprint = 2 * (L + 1) * tr * row_bytes

    out = pl.pallas_call(
        _make_sum_scale_kernel(L, 1.0 / L),
        out_shape=jax.ShapeDtypeStruct((rows, cols), dtype),
        grid_spec=pltpu.PrefetchScalarGridSpec(
            num_scalar_prefetch=0,
            grid=(grid_r,),
            in_specs=[pl.BlockSpec((tr, cols), lambda i: (i, 0)) for _ in range(L)],
            out_specs=pl.BlockSpec((tr, cols), lambda i: (i, 0)),
        ),
        compiler_params=pltpu.CompilerParams(
            dimension_semantics=("parallel",),
            vmem_limit_bytes=_vmem_limit(footprint, cap),
        ),
    )(*slabs)

    if pad:
        out = out.reshape(rows * cols)[:total]
    return out.reshape(shape)


# --------------------------------- reduce=True (fused) ---------------------------------

def _average_layers_reduced(layer_arrs):
    L = len(layer_arrs)
    B, N, D = layer_arrs[0].shape
    dtype = layer_arrs[0].dtype
    itemsize = jnp.dtype(dtype).itemsize
    capacity, budget, cap, _ = _vmem_budget()

    def footprint(tb, tn):
        return (2 * L * tb * tn * D * itemsize      # double-buffered layer inputs
                + 2 * tb * D * itemsize             # output tile
                + tb * D * 4)                       # f32 accumulator scratch

    tb = B if B <= 8 else 8
    if footprint(tb, N) <= budget:
        tn = N
        if B > 8:
            tb_max = budget // max(footprint(1, N), 1)
            tb_grown = (tb_max // 8) * 8
            if tb_grown >= B:
                tb = B
            elif tb_grown > tb:
                tb = tb_grown
    else:
        # Tile the sequence axis; remainder rows are masked inside the kernel.
        tn_budget = (budget - tb * D * (2 * itemsize + 4)) // max(2 * L * tb * D * itemsize, 1)
        tn = min(N, max(8, (tn_budget // 8) * 8))

    grid = (pl.cdiv(B, tb), pl.cdiv(N, tn))

    out = pl.pallas_call(
        _make_reduced_kernel(L, 1.0 / (L * N), N, tn),
        out_shape=jax.ShapeDtypeStruct((B, D), dtype),
        grid_spec=pltpu.PrefetchScalarGridSpec(
            num_scalar_prefetch=0,
            grid=grid,
            in_specs=[pl.BlockSpec((tb, tn, D), lambda b, n: (b, n, 0))
                      for _ in range(L)],
            out_specs=pl.BlockSpec((tb, D), lambda b, n: (b, 0)),
            scratch_shapes=[pltpu.VMEM((tb, D), jnp.float32)],
        ),
        compiler_params=pltpu.CompilerParams(
            dimension_semantics=("parallel", "arbitrary"),
            vmem_limit_bytes=_vmem_limit(footprint(tb, tn), cap),
        ),
    )(*layer_arrs)
    return out


# -------------------------------------- wrapper --------------------------------------

def average_layers_forward(_unused, layer_features, layers, reduce=False):
    """Mirrors AverageLayers.forward(_, layer_features) -> averaged features."""
    sel = [layer_features[i] for i in layers]
    if reduce:
        return _average_layers_reduced(sel)
    return _average_layers_elementwise(sel)


if __name__ == "__main__":
    # Small shapes consistent with the module: layer features are [B, N, D] token maps.
    B, N, D = 2, 8, 32
    num_layers_total = 6
    layers = (1, 3, 5)

    key = jax.random.PRNGKey(0)
    keys = jax.random.split(key, num_layers_total + 1)
    x_unused = jax.random.normal(keys[0], (B, N, D), dtype=jnp.float32)
    layer_features = [
        jax.random.normal(keys[i + 1], (B, N, D), dtype=jnp.float32)
        for i in range(num_layers_total)
    ]

    # reduce=False (module default)
    feats = average_layers_forward(x_unused, layer_features, layers, reduce=False)
    feats = jax.block_until_ready(feats)

    # reduce=True path
    reduced = average_layers_forward(x_unused, layer_features, layers, reduce=True)
    reduced = jax.block_until_ready(reduced)

    # Pure-JAX references matching torch semantics.
    stacked = jnp.stack([layer_features[i] for i in layers], axis=-1)
    ref_feats = stacked.mean(axis=-1)
    ref_reduced = ref_feats.mean(axis=1)

    assert feats.shape == (B, N, D)
    assert reduced.shape == (B, D)
    assert jnp.allclose(feats, ref_feats, atol=1e-5, rtol=1e-5), "reduce=False mismatch"
    assert jnp.allclose(reduced, ref_reduced, atol=1e-5, rtol=1e-5), "reduce=True mismatch"

    print("KERNEL_OK")
</pallas_src>

<mosaic_0001>
module attributes {stable_mosaic.version = 11 : i64} {
  func.func @kernel(%arg0: i32, %arg1: memref<1x512xf32, #tpu.memory_space<vmem>>, %arg2: memref<1x512xf32, #tpu.memory_space<vmem>>, %arg3: memref<1x512xf32, #tpu.memory_space<vmem>>, %arg4: memref<1x512xf32, #tpu.memory_space<vmem>>) attributes {dimension_semantics = [#tpu.dimension_semantics<parallel>], iteration_bounds = array<i64: 1>, scalar_prefetch = 0 : i64, scratch_operands = 0 : i64, tpu.core_type = #tpu.core_type<tc>, window_params = [{transform_indices = @transform_0, window_bounds = array<i64: 1, 512>}, {transform_indices = @transform_1, window_bounds = array<i64: 1, 512>}, {transform_indices = @transform_2, window_bounds = array<i64: 1, 512>}, {transform_indices = @transform_3, window_bounds = array<i64: 1, 512>}]} {
    %c0 = arith.constant 0 : index
    %c0_0 = arith.constant 0 : index
    %0 = vector.load %arg1[%c0, %c0_0] : memref<1x512xf32, #tpu.memory_space<vmem>>, vector<1x512xf32>
    %c0_1 = arith.constant 0 : index
    %c0_2 = arith.constant 0 : index
    %1 = vector.load %arg2[%c0_1, %c0_2] : memref<1x512xf32, #tpu.memory_space<vmem>>, vector<1x512xf32>
    %2 = arith.addf %0, %1 : vector<1x512xf32>
    %c0_3 = arith.constant 0 : index
    %c0_4 = arith.constant 0 : index
    %3 = vector.load %arg3[%c0_3, %c0_4] : memref<1x512xf32, #tpu.memory_space<vmem>>, vector<1x512xf32>
    %4 = arith.addf %2, %3 : vector<1x512xf32>
    %cst = arith.constant 0.333333343 : f32
    %5 = vector.broadcast %cst : f32 to vector<1x512xf32>
    %6 = arith.mulf %4, %5 : vector<1x512xf32>
    %c0_5 = arith.constant 0 : index
    %c0_6 = arith.constant 0 : index
    %7 = vector.load %arg4[%c0_5, %c0_6] : memref<1x512xf32, #tpu.memory_space<vmem>>, vector<1x512xf32>
    tpu.vector_store %arg4[%c0_5, %c0_6], %6 {strides = array<i32>} : memref<1x512xf32, #tpu.memory_space<vmem>>, vector<1x512xf32>,
    return
  }
  func.func @transform_0(%arg0: i32) -> (i32, i32) {
    %c0_i32 = arith.constant 0 : i32
    %c0_i32_0 = arith.constant 0 : i32
    return %arg0, %c0_i32 : i32, i32
  }
  func.func @transform_1(%arg0: i32) -> (i32, i32) {
    %c0_i32 = arith.constant 0 : i32
    %c0_i32_0 = arith.constant 0 : i32
    return %arg0, %c0_i32 : i32, i32
  }
  func.func @transform_2(%arg0: i32) -> (i32, i32) {
    %c0_i32 = arith.constant 0 : i32
    %c0_i32_0 = arith.constant 0 : i32
    return %arg0, %c0_i32 : i32, i32
  }
  func.func @transform_3(%arg0: i32) -> (i32, i32) {
    %c0_i32 = arith.constant 0 : i32
    %c0_i32_0 = arith.constant 0 : i32
    return %arg0, %c0_i32 : i32, i32
  }
}

</mosaic_0001>

<bundles_post_ra>
// kernel: tpu_custom_call.1
= control target key start
LH: loop header
LB: loop body
LE: loop exit
PB: predicated region body
PF: predicated region fallthrough
CT: control target
= control target key end

     0   :  { %8 = vsyncpa [#allocation3], 0  ;;  %s203_s0 = inlined_call_operand.hbm [shape: f32[1,512], index: 0, kind: input, shape index: {}]   ;;  %s204_s1 = inlined_call_operand.hbm [shape: f32[1,512], index: 1, kind: input, shape index: {}]   ;;  %s205_s2 = inlined_call_operand.vmem [shape: f32[1,512], index: 2, kind: input, shape index: {}]   ;;  %s206_s3 = inlined_call_operand.hbm [shape: f32[1,512], index: 3, kind: output, shape index: {}]  }
   0x1   :  { %9 = vsyncpa [#allocation6], 0 }
   0x2   :  { %10 = vsyncpa [#allocation4], 0  ;;  %s141_s12 = smov [#allocation2]   ;;  %s142_s14 = smov [#allocation5]  }
   0x3   :  { %s17_s13 = sshll.u32 %s141_s12, 4  ;;  %s27_s15 = sshll.u32 %s142_s14, 4  ;;  %s18_s13 = int_to_ptr.vmem [resolvable:$true] %s17_s13  ;;  %s28_s15 = int_to_ptr.vmem [resolvable:$true] %s27_s15 }
   0x4   :  { %s69_s18 = scalar_lea.hbm %s203_s0, 64 }
   0x5   :  { %p70_p0 = scmp.ne.s32.totalorder %s203_s0, %s69_s18  ;;  %p73_p1 = scmp.lt.u32.totalorder %s69_s18, %s203_s0 }
   0x7   :  { %p75_p2 = pnand %p73_p1, %p70_p0 }
   0x9   :  { %78 = shalt.err (!%p75_p2)
}
   0xa   :  { %s79_s23 = scalar_lea.vmem %s18_s13, 64  ;;  %p84_p4 = scmp.lt.s32.totalorder %s18_s13, %s18_s13 }
   0xb   :  { %p80_p3 = scmp.ne.s32.totalorder %s18_s13, %s79_s23  ;;  %p85_p5 = scmp.lt.s32.totalorder %s79_s23, %s79_s23 }
   0xd   :  { %p86_p6 = por %p85_p5, %p84_p4 }
   0xf   :  { %p87_p7 = pnand %p86_p6, %p80_p3 }
  0x11   :  { %90 = shalt.err (!%p87_p7)
}
  0x12   :  { %20 = dma.hbm_to_vmem [thread:$0]  %s203_s0, 64, %s18_s13, [#allocation3]  }
  0x13   :  { %s91_s28 = scalar_lea.hbm %s204_s1, 64 }
  0x14   :  { %p92_p8 = scmp.ne.s32.totalorder %s204_s1, %s91_s28  ;;  %p95_p9 = scmp.lt.u32.totalorder %s91_s28, %s204_s1 }
  0x16   :  { %p97_p10 = pnand %p95_p9, %p92_p8 }
  0x18   :  { %100 = shalt.err (!%p97_p10)
}
  0x19   :  { %s101_s6 = scalar_lea.vmem %s28_s15, 64  ;;  %p106_p12 = scmp.lt.s32.totalorder %s28_s15, %s28_s15 }
  0x1a   :  { %p102_p11 = scmp.ne.s32.totalorder %s28_s15, %s101_s6  ;;  %p107_p13 = scmp.lt.s32.totalorder %s101_s6, %s101_s6 }
  0x1c   :  { %p108_p0 = por %p107_p13, %p106_p12 }
  0x1e   :  { %p109_p1 = pnand %p108_p0, %p102_p11 }
  0x20   :  { %112 = shalt.err (!%p109_p1)
}
  0x21   :  { %30 = dma.hbm_to_vmem [thread:$0]  %s204_s1, 64, %s28_s15, [#allocation6]  }
  0x22   :  { %135 = dma.done.wait [#allocation3], 64  }
  0x23   :  { %136 = vsyncadd [#allocation3], 4294967232 }
  0x24   :  { %137 = dma.done.wait [#allocation6], 64  }
  0x25   :  { %138 = vsyncadd [#allocation6], 4294967232  ;;  %v39_v0 = vld [vmem:[#allocation2] sm:$0xf]  ;;  %v40_v1 = vld [vmem:[#allocation5] sm:$0xf]  ;;  %v45_v3 = vlaneseq }
  0x26   :  { %v42_v2 = vld [vmem:[%s205_s2] sm:$0xf]  ;;  %v41_v4 = vadd.f32 %v40_v1, %v39_v0  ;;  %s143_s10 = smov [#allocation7]  }
  0x27   :  { %s56_s11 = sshll.u32 %s143_s10, 4  ;;  %vm47_vm0 = vcmp.lt.s32.totalorder %v45_v3, 512  ;;  %s57_s11 = int_to_ptr.vmem [resolvable:$true] %s56_s11 }
  0x28   :  { %v43_v5 = vadd.f32 %v42_v2, %v41_v4  ;;  %s113_s1 = scalar_lea.vmem %s57_s11, 64  ;;  %p118_p3 = scmp.lt.s32.totalorder %s57_s11, %s57_s11 }
  0x29   :  { %p114_p2 = scmp.ne.s32.totalorder %s57_s11, %s113_s1  ;;  %p119_p4 = scmp.lt.s32.totalorder %s113_s1, %s113_s1 }
  0x2a   :  { %v44_v6 = vmul.f32 0.33333334, %v43_v5 }
  0x2b   :  { %p120_p5 = por %p119_p4, %p118_p3 }
  0x2c   :  { %49 = vst.msk [vmem:[#allocation7] sm:$0xf] %vm47_vm0, %v44_v6 }
  0x2d   :  { %p121_p6 = pnand %p120_p5, %p114_p2 }
  0x2f   :  { %124 = shalt.err (!%p121_p6)
}
  0x30   :  { %s125_s2 = scalar_lea.hbm %s206_s3, 64 }
  0x31   :  { %p126_p7 = scmp.ne.s32.totalorder %s206_s3, %s125_s2  ;;  %p129_p8 = scmp.lt.u32.totalorder %s125_s2, %s206_s3 }
  0x33   :  { %p131_p9 = pnand %p129_p8, %p126_p7 }
  0x35   :  { %134 = shalt.err (!%p131_p9)
}
  0x36   :  { %59 = dma.vmem_to_hbm [thread:$0]  %s57_s11, 64, %s206_s3, [#allocation4]  }
  0x37   :  { %139 = dma.done.wait [#allocation4], 64  }
  0x38   :  { %140 = vsyncadd [#allocation4], 4294967232 }
  0x39   :  { %63 = vsyncpa [#allocation3], 1 }
  0x3a   :  { %64 = vsyncpa [#allocation6], 1 }
  0x3b   :  { %65 = vsyncpa [#allocation4], 1 }

</bundles_post_ra>
